<compile_context>
chip_gen: v5e
topology: v5e:2x2
jax: 0.10.0
libtpu: 0.0.40
codegen_flags: <defaults>
</compile_context>

<pallas_src>
import jax
import jax.numpy as jnp
from jax.experimental import pallas as pl
from jax.experimental.pallas import tpu as pltpu


def _make_ensemble_kernel(n_members: int, c_pad: int):
    """Kernel computing all ensemble members + mean/std in one shot."""

    def kernel(x_ref, w1_ref, b1_ref, w2_ref, b2_ref, mean_ref, std_ref):
        # --- layer 1: one MXU matmul for all members: [B, D] @ [D, N*H] ---
        h = jnp.dot(x_ref[...], w1_ref[...], preferred_element_type=jnp.float32)
        h = jnp.maximum(h + b1_ref[...], 0.0)                       # [B, N*H]

        # --- layer 2: block-diagonal W2 -> all member logits in one matmul ---
        logits = jnp.dot(h, w2_ref[...],
                         preferred_element_type=jnp.float32) + b2_ref[...]  # [B, N*C_pad]

        # --- ensemble statistics over N static, lane-aligned slices ---
        members = [logits[:, k * c_pad:(k + 1) * c_pad] for k in range(n_members)]

        s = members[0]
        for m in members[1:]:
            s = s + m
        mean = s * (1.0 / n_members)                                 # [B, C_pad]

        # centered two-pass variance (matches torch.std(unbiased=False), avoids
        # the sumsq - mean^2 cancellation issue)
        sq = (members[0] - mean) ** 2
        for m in members[1:]:
            sq = sq + (m - mean) ** 2
        var = sq * (1.0 / n_members)

        mean_ref[...] = mean.astype(mean_ref.dtype)
        std_ref[...] = jnp.sqrt(var).astype(std_ref.dtype)

    return kernel


def combined_posterior_network(x_flat, w1, b1, w2, b2):
    """x_flat: [B, D] float32. Returns (mean [B, C], std [B, C])."""
    N, D, H = w1.shape
    C = w2.shape[2]
    B = x_flat.shape[0]

    # Lane-dense output width (pad classes up to a full 128-lane vreg row).
    C_pad = ((C + 127) // 128) * 128

    # --- wrapper-side layout plumbing (pure reshapes/pads, no compute change) ---
    # Layer 1: concatenate member weights along the hidden axis -> [D, N*H].
    w1_cat = jnp.transpose(w1, (1, 0, 2)).reshape(D, N * H)
    b1_cat = b1.reshape(1, N * H)

    # Layer 2: block-diagonal [N*H, N*C_pad]; block (k, k) = W2[k] (padded in C).
    w2_pad = jnp.pad(w2, ((0, 0), (0, 0), (0, C_pad - C)))          # [N, H, C_pad]
    eye = jnp.eye(N, dtype=w2.dtype)
    w2_bd = (eye[:, None, :, None] * w2_pad[:, :, None, :]).reshape(N * H, N * C_pad)
    b2_cat = jnp.pad(b2, ((0, 0), (0, 0), (0, C_pad - C))).reshape(1, N * C_pad)

    # Everything fits comfortably in VMEM at these sizes; single grid-free call,
    # full arrays resident in VMEM.
    vmem_spec = pl.BlockSpec(memory_space=pltpu.MemorySpace.VMEM)

    mean_p, std_p = pl.pallas_call(
        _make_ensemble_kernel(N, C_pad),
        out_shape=(jax.ShapeDtypeStruct((B, C_pad), jnp.float32),
                   jax.ShapeDtypeStruct((B, C_pad), jnp.float32)),
        in_specs=[vmem_spec] * 5,
        out_specs=(vmem_spec, vmem_spec),
    )(x_flat, w1_cat, b1_cat, w2_bd, b2_cat)

    # Slice the lane-padding back off.
    return mean_p[:, :C], std_p[:, :C]


def _reference(x_flat, w1, b1, w2, b2):
    """Plain-JAX reference matching the PyTorch module."""
    outs = []
    for k in range(w1.shape[0]):
        h = jnp.maximum(x_flat @ w1[k] + b1[k], 0.0)
        outs.append(h @ w2[k] + b2[k])
    cat = jnp.stack(outs, axis=2)                       # [B, C, N]
    mean = jnp.mean(cat, axis=2)
    std = jnp.sqrt(jnp.mean((cat - mean[..., None]) ** 2, axis=2))
    return mean, std


if __name__ == "__main__":
    key = jax.random.PRNGKey(0)

    # Small MNIST-like shapes: batch=8, 1x8x8 images -> D=64, hidden=32,
    # C=10 classes, ensemble of N=4 networks (so N*H = 128 = one vreg lane row).
    B, IMG_C, IMG_H, IMG_W = 8, 1, 8, 8
    D, HID, C, N = IMG_C * IMG_H * IMG_W, 32, 10, 4

    kx, k1, k2, k3, k4 = jax.random.split(key, 5)
    x_nchw = jax.random.normal(kx, (B, IMG_C, IMG_H, IMG_W), jnp.float32)
    x_flat = x_nchw.reshape(B, D)                       # flatten NCHW -> [B, D]

    w1 = jax.random.normal(k1, (N, D, HID), jnp.float32) * 0.1
    b1 = jax.random.normal(k2, (N, 1, HID), jnp.float32) * 0.1
    w2 = jax.random.normal(k3, (N, HID, C), jnp.float32) * 0.1
    b2 = jax.random.normal(k4, (N, 1, C), jnp.float32) * 0.1

    mean, std = combined_posterior_network(x_flat, w1, b1, w2, b2)
    jax.block_until_ready((mean, std))

    ref_mean, ref_std = _reference(x_flat, w1, b1, w2, b2)
    assert mean.shape == (B, C) and std.shape == (B, C)
    assert jnp.allclose(mean, ref_mean, atol=1e-5, rtol=1e-5)
    assert jnp.allclose(std, ref_std, atol=1e-5, rtol=1e-5)

    print("KERNEL_OK")
</pallas_src>

<mosaic_0001>
module attributes {stable_mosaic.version = 11 : i64} {
  func.func @kernel(%arg0: memref<8x64xf32, #tpu.memory_space<vmem>>, %arg1: memref<64x128xf32, #tpu.memory_space<vmem>>, %arg2: memref<1x128xf32, #tpu.memory_space<vmem>>, %arg3: memref<128x512xf32, #tpu.memory_space<vmem>>, %arg4: memref<1x512xf32, #tpu.memory_space<vmem>>, %arg5: memref<8x128xf32, #tpu.memory_space<vmem>>, %arg6: memref<8x128xf32, #tpu.memory_space<vmem>>) attributes {dimension_semantics = [], scalar_prefetch = 0 : i64, scratch_operands = 0 : i64, tpu.core_type = #tpu.core_type<tc>} {
    %c0 = arith.constant 0 : index
    %c0_0 = arith.constant 0 : index
    %0 = vector.load %arg0[%c0, %c0_0] : memref<8x64xf32, #tpu.memory_space<vmem>>, vector<8x64xf32>
    %c0_1 = arith.constant 0 : index
    %c0_2 = arith.constant 0 : index
    %1 = vector.load %arg1[%c0_1, %c0_2] : memref<64x128xf32, #tpu.memory_space<vmem>>, vector<64x128xf32>
    %cst = arith.constant dense<0.000000e+00> : vector<8x128xf32>
    %2 = tpu.matmul %0, %1, %cst {dimension_numbers = #tpu.dot_dimension_numbers<[1], [0], [0], [1], [0, 0, 1, 1], [], []>} : vector<8x64xf32>, vector<64x128xf32>, vector<8x128xf32> -> vector<8x128xf32>
    %c0_3 = arith.constant 0 : index
    %c0_4 = arith.constant 0 : index
    %3 = vector.load %arg2[%c0_3, %c0_4] : memref<1x128xf32, #tpu.memory_space<vmem>>, vector<1x128xf32>
    %4 = vector.broadcast %3 : vector<1x128xf32> to vector<8x128xf32>
    %5 = arith.addf %2, %4 : vector<8x128xf32>
    %cst_5 = arith.constant 0.000000e+00 : f32
    %6 = vector.broadcast %cst_5 : f32 to vector<8x128xf32>
    %7 = arith.maximumf %5, %6 : vector<8x128xf32>
    %c0_6 = arith.constant 0 : index
    %c0_7 = arith.constant 0 : index
    %8 = vector.load %arg3[%c0_6, %c0_7] : memref<128x512xf32, #tpu.memory_space<vmem>>, vector<128x512xf32>
    %cst_8 = arith.constant dense<0.000000e+00> : vector<8x512xf32>
    %9 = tpu.matmul %7, %8, %cst_8 {dimension_numbers = #tpu.dot_dimension_numbers<[1], [0], [0], [1], [0, 0, 1, 1], [], []>} : vector<8x128xf32>, vector<128x512xf32>, vector<8x512xf32> -> vector<8x512xf32>
    %c0_9 = arith.constant 0 : index
    %c0_10 = arith.constant 0 : index
    %10 = vector.load %arg4[%c0_9, %c0_10] : memref<1x512xf32, #tpu.memory_space<vmem>>, vector<1x512xf32>
    %11 = vector.broadcast %10 : vector<1x512xf32> to vector<8x512xf32>
    %12 = arith.addf %9, %11 : vector<8x512xf32>
    %13 = vector.extract_strided_slice %12 {offsets = [0, 0], sizes = [8, 128], strides = [1, 1]} : vector<8x512xf32> to vector<8x128xf32>
    %14 = vector.extract_strided_slice %12 {offsets = [0, 128], sizes = [8, 128], strides = [1, 1]} : vector<8x512xf32> to vector<8x128xf32>
    %15 = vector.extract_strided_slice %12 {offsets = [0, 256], sizes = [8, 128], strides = [1, 1]} : vector<8x512xf32> to vector<8x128xf32>
    %16 = vector.extract_strided_slice %12 {offsets = [0, 384], sizes = [8, 128], strides = [1, 1]} : vector<8x512xf32> to vector<8x128xf32>
    %17 = arith.addf %13, %14 : vector<8x128xf32>
    %18 = arith.addf %17, %15 : vector<8x128xf32>
    %19 = arith.addf %18, %16 : vector<8x128xf32>
    %cst_11 = arith.constant 2.500000e-01 : f32
    %20 = vector.broadcast %cst_11 : f32 to vector<8x128xf32>
    %21 = arith.mulf %19, %20 : vector<8x128xf32>
    %22 = arith.subf %13, %21 : vector<8x128xf32>
    %23 = arith.mulf %22, %22 : vector<8x128xf32>
    %24 = arith.subf %14, %21 : vector<8x128xf32>
    %25 = arith.mulf %24, %24 : vector<8x128xf32>
    %26 = arith.addf %23, %25 : vector<8x128xf32>
    %27 = arith.subf %15, %21 : vector<8x128xf32>
    %28 = arith.mulf %27, %27 : vector<8x128xf32>
    %29 = arith.addf %26, %28 : vector<8x128xf32>
    %30 = arith.subf %16, %21 : vector<8x128xf32>
    %31 = arith.mulf %30, %30 : vector<8x128xf32>
    %32 = arith.addf %29, %31 : vector<8x128xf32>
    %cst_12 = arith.constant 2.500000e-01 : f32
    %33 = vector.broadcast %cst_12 : f32 to vector<8x128xf32>
    %34 = arith.mulf %32, %33 : vector<8x128xf32>
    %c0_13 = arith.constant 0 : index
    %c0_14 = arith.constant 0 : index
    %35 = vector.load %arg5[%c0_13, %c0_14] : memref<8x128xf32, #tpu.memory_space<vmem>>, vector<8x128xf32>
    tpu.vector_store %arg5[%c0_13, %c0_14], %21 {strides = array<i32>} : memref<8x128xf32, #tpu.memory_space<vmem>>, vector<8x128xf32>,
    %36 = math.sqrt %34 : vector<8x128xf32>
    %c0_15 = arith.constant 0 : index
    %c0_16 = arith.constant 0 : index
    %37 = vector.load %arg6[%c0_15, %c0_16] : memref<8x128xf32, #tpu.memory_space<vmem>>, vector<8x128xf32>
    tpu.vector_store %arg6[%c0_15, %c0_16], %36 {strides = array<i32>} : memref<8x128xf32, #tpu.memory_space<vmem>>, vector<8x128xf32>,
    return
  }
}

</mosaic_0001>

<bundles_post_ra>
// kernel: tpu_custom_call.1
= control target key start
LH: loop header
LB: loop body
LE: loop exit
PB: predicated region body
PF: predicated region fallthrough
CT: control target
= control target key end

     0   :  { %12 = vsyncpa [#allocation3], 0  ;;  %s574_s0 = inlined_call_operand.hbm [shape: f32[8,64], index: 0, kind: input, shape index: {}]   ;;  %s575_s1 = inlined_call_operand.hbm [shape: f32[64,128], index: 1, kind: input, shape index: {}]   ;;  %s576_s2 = inlined_call_operand.vmem [shape: f32[1,128], index: 2, kind: input, shape index: {}]   ;;  %s577_s3 = inlined_call_operand.hbm [shape: f32[128,512], index: 3, kind: input, shape index: {}]   ;;  %s578_s4 = inlined_call_operand.hbm [shape: f32[1,512], index: 4, kind: input, shape index: {}]   ;;  %s579_s5 = inlined_call_operand.hbm [shape: f32[8,128], index: 5, kind: output, shape index: {0}]   ;;  %s580_s6 = inlined_call_operand.hbm [shape: f32[8,128], index: 6, kind: output, shape index: {1}]  }
   0x1   :  { %13 = vsyncpa [#allocation6], 0 }
   0x2   :  { %14 = vsyncpa [#allocation9], 0 }
   0x3   :  { %15 = vsyncpa [#allocation4], 0  ;;  %s32_s23 = sshll.u32 %s575_s1, 4  ;;  %s33_s23 = int_to_ptr.hbm [resolvable:$true] %s32_s23 }
   0x4   :  { %16 = vsyncpa [#allocation12], 0  ;;  %s508_s24 = smov [#allocation5]   ;;  %s22_s28 = sshll.u32 %s574_s0, 4  ;;  %s23_s28 = int_to_ptr.hbm [resolvable:$true] %s22_s28 }
   0x5   :  { %s34_s25 = sshll.u32 %s508_s24, 4  ;;  %s509_s29 = smov 128   ;;  %s35_s25 = int_to_ptr.vmem [resolvable:$true] %s34_s25 }
   0x6   :  { %s510_s30 = smov 8   ;;  %s511_s7 = smov [#allocation2]  }
   0x7   :  { %40 = dma.hbm_to_vmem [thread:$0]  %s33_s23, 1024, %s35_s25, [#allocation6], %s509_s29, %s509_s29, %s510_s30  }
   0x8   :  { %s24_s8 = sshll.u32 %s511_s7, 4  ;;  %s47_s11 = sshll.u32 %s577_s3, 4  ;;  %s25_s8 = int_to_ptr.vmem [resolvable:$true] %s24_s8  ;;  %s48_s11 = int_to_ptr.hbm [resolvable:$true] %s47_s11 }
   0x9   :  { %27 = dma.hbm_to_vmem [thread:$0]  %s23_s28, 128, %s25_s8, [#allocation3]  }
   0xa   :  { %s512_s1 = smov [#allocation7]   ;;  %s61_s0 = sshll.u32 %s578_s4, 4  ;;  %s62_s0 = int_to_ptr.hbm [resolvable:$true] %s61_s0 }
   0xb   :  { %s49_s12 = sshll.u32 %s512_s1, 4  ;;  %s513_s15 = smov 512   ;;  %s50_s12 = int_to_ptr.vmem [resolvable:$true] %s49_s12 }
   0xc   :  { %s514_s16 = smov 32   ;;  %s515_s17 = smov [#allocation8]  }
   0xd   :  { %55 = dma.hbm_to_vmem [thread:$0]  %s48_s11, 8192, %s50_s12, [#allocation6], %s513_s15, %s513_s15, %s514_s16  }
   0xe   :  { %s63_s18 = sshll.u32 %s515_s17, 4  ;;  %s64_s18 = int_to_ptr.vmem [resolvable:$true] %s63_s18 }
   0xf   :  { %66 = dma.hbm_to_vmem [thread:$0]  %s62_s0, 64, %s64_s18, [#allocation9]  }
  0x10   :  { %498 = dma.done.wait [#allocation3], 128  }
  0x11   :  { %499 = vsyncadd [#allocation3], 4294967168 }
  0x12   :  { %500 = dma.done.wait [#allocation6], 9216  }
  0x13   :  { %501 = vsyncadd [#allocation6], 4294958080 }
  0x14   :  { %502 = dma.done.wait [#allocation9], 64  }
  0x15   :  { %503 = vsyncadd [#allocation9], 4294967232  ;;  %v91_v0 = vld [vmem:[#allocation5 + $0x38] sm:$0xff]  ;;  %v90_v1 = vld [vmem:[#allocation5 + $0x30] sm:$0xff]  ;;  %vm96_vm0 = vcmask 523264   ;;  %s312_s22 = sshll.u32 %s579_s5, 4  ;;  %s313_s22 = int_to_ptr.hbm [resolvable:$true] %s312_s22 }
  0x16   :  { %108 = vmatpush.msra.mxu0 %v91_v0  ;;  %v89_v2 = vld [vmem:[#allocation5 + $0x28] sm:$0xff]  ;;  %v181_v3 = vld [vmem:[#allocation7 + $0x1e0] sm:$0xff]  ;;  %v183_v5 = vld [vmem:[#allocation7 + $0x1f0] sm:$0xff]  ;;  %s517_s5 = smov [#allocation11]   ;;  %s323_s26 = sshll.u32 %s580_s6, 4  ;;  %s324_s26 = int_to_ptr.hbm [resolvable:$true] %s323_s26 }
  0x17   :  { %v182_v4 = vld [vmem:[#allocation7 + $0x1e8] sm:$0xff]  ;;  %v88_v6 = vld [vmem:[#allocation5 + $0x20] sm:$0xff]  ;;  %195 = vmatpush.msra.mxu1 %v181_v3  ;;  %235 = vmatpush.msra.mxu3 %v183_v5  ;;  %v179_v9 = vld [vmem:[#allocation7 + $0x1d0] sm:$0xff]  ;;  %s321_s23 = sshll.u32 %s517_s5, 4  ;;  %s322_s23 = int_to_ptr.vmem [resolvable:$true] %s321_s23 }
  0x18   :  { %109 = vmatpush.msra.mxu0 %v90_v1  ;;  %215 = vmatpush.msra.mxu2 %v182_v4  ;;  %v177_v7 = vld [vmem:[#allocation7 + $0x1c0] sm:$0xff]  ;;  %v178_v8 = vld [vmem:[#allocation7 + $0x1c8] sm:$0xff]  ;;  %v87_v11 = vld [vmem:[#allocation5 + $0x18] sm:$0xff] }
  0x19   :  { %v173_v10 = vld [vmem:[#allocation7 + $0x1a0] sm:$0xff]  ;;  %196 = vmatpush.msra.mxu1 %v177_v7  ;;  %v174_v12 = vld [vmem:[#allocation7 + $0x1a8] sm:$0xff]  ;;  %v175_v13 = vld [vmem:[#allocation7 + $0x1b0] sm:$0xff]  ;;  %236 = vmatpush.msra.mxu3 %v179_v9 }
  0x1a   :  { %110 = vmatpush.msra.mxu0 %v89_v2  ;;  %216 = vmatpush.msra.mxu2 %v178_v8  ;;  %v169_v14 = vld [vmem:[#allocation7 + $0x180] sm:$0xff]  ;;  %v170_v15 = vld [vmem:[#allocation7 + $0x188] sm:$0xff]  ;;  %v86_v16 = vld [vmem:[#allocation5 + $0x10] sm:$0xff] }
  0x1b   :  { %197 = vmatpush.msra.mxu1 %v173_v10  ;;  %v171_v17 = vld [vmem:[#allocation7 + $0x190] sm:$0xff]  ;;  %237 = vmatpush.msra.mxu3 %v175_v13  ;;  %v165_v18 = vld [vmem:[#allocation7 + $0x160] sm:$0xff]  ;;  %v166_v19 = vld [vmem:[#allocation7 + $0x168] sm:$0xff] }
  0x1c   :  { %111 = vmatpush.msra.mxu0 %v88_v6  ;;  %217 = vmatpush.msra.mxu2 %v174_v12  ;;  %v85_v20 = vld [vmem:[#allocation5 + $0x8] sm:$0xff]  ;;  %v167_v21 = vld [vmem:[#allocation7 + $0x170] sm:$0xff]  ;;  %v161_v22 = vld [vmem:[#allocation7 + $0x140] sm:$0xff] }
  0x1d   :  { %198 = vmatpush.msra.mxu1 %v169_v14  ;;  %238 = vmatpush.msra.mxu3 %v171_v17  ;;  %v162_v23 = vld [vmem:[#allocation7 + $0x148] sm:$0xff]  ;;  %v84_v24 = vld [vmem:[#allocation5] sm:$0xff]  ;;  %v163_v25 = vld [vmem:[#allocation7 + $0x150] sm:$0xff] }
  0x1e   :  { %112 = vmatpush.msra.mxu0 %v87_v11  ;;  %218 = vmatpush.msra.mxu2 %v170_v15  ;;  %v83_v26 = vld [vmem:[#allocation2] sm:$0xff]  ;;  %v157_v27 = vld [vmem:[#allocation7 + $0x120] sm:$0xff]  ;;  %v158_v29 = vld [vmem:[#allocation7 + $0x128] sm:$0xff] }
  0x1f   :  { %199 = vmatpush.msra.mxu1 %v165_v18  ;;  %239 = vmatpush.msra.mxu3 %v167_v21  ;;  %v184_v28 = vld [vmem:[#allocation7 + $0x1f8] sm:$0xff]  ;;  %v159_v30 = vld [vmem:[#allocation7 + $0x130] sm:$0xff]  ;;  %v153_v31 = vld [vmem:[#allocation7 + $0x100] sm:$0xff] }
  0x20   :  { %113 = vmatpush.msra.mxu0 %v86_v16  ;;  %219 = vmatpush.msra.mxu2 %v166_v19  ;;  %v180_v32 = vld [vmem:[#allocation7 + $0x1d8] sm:$0xff]  ;;  %v154_v33 = vld [vmem:[#allocation7 + $0x108] sm:$0xff]  ;;  %v155_v34 = vld [vmem:[#allocation7 + $0x110] sm:$0xff] }
  0x21   :  { %200 = vmatpush.msra.mxu1 %v161_v22  ;;  %240 = vmatpush.msra.mxu3 %v163_v25  ;;  %v149_v35 = vld [vmem:[#allocation7 + $0xe0] sm:$0xff]  ;;  %v176_v36 = vld [vmem:[#allocation7 + $0x1b8] sm:$0xff]  ;;  %v150_v37 = vld [vmem:[#allocation7 + $0xe8] sm:$0xff] }
  0x22   :  { %114 = vmatpush.msra.mxu0 %v85_v20  ;;  %220 = vmatpush.msra.mxu2 %v162_v23  ;;  %v151_v38 = vld [vmem:[#allocation7 + $0xf0] sm:$0xff]  ;;  %v145_v39 = vld [vmem:[#allocation7 + $0xc0] sm:$0xff]  ;;  %v172_v40 = vld [vmem:[#allocation7 + $0x198] sm:$0xff] }
  0x23   :  { %201 = vmatpush.msra.mxu1 %v157_v27  ;;  %241 = vmatpush.msra.mxu3 %v159_v30  ;;  %v146_v41 = vld [vmem:[#allocation7 + $0xc8] sm:$0xff]  ;;  %v147_v42 = vld [vmem:[#allocation7 + $0xd0] sm:$0xff]  ;;  %v141_v43 = vld [vmem:[#allocation7 + $0xa0] sm:$0xff] }
  0x24   :  { %115 = vmatpush.msra.mxu0 %v84_v24  ;;  %221 = vmatpush.msra.mxu2 %v158_v29  ;;  %v168_v44 = vld [vmem:[#allocation7 + $0x178] sm:$0xff]  ;;  %v142_v45 = vld [vmem:[#allocation7 + $0xa8] sm:$0xff]  ;;  %v143_v46 = vld [vmem:[#allocation7 + $0xb0] sm:$0xff] }
  0x25   :  { %340 = vmatmul.msk.f32.vlgmr.msra.gmra.mxu0 %vm96_vm0, %v83_v26  ;;  %202 = vmatpush.msra.mxu1 %v153_v31  ;;  %v137_v47 = vld [vmem:[#allocation7 + $0x80] sm:$0xff]  ;;  %v164_v48 = vld [vmem:[#allocation7 + $0x158] sm:$0xff]  ;;  %v138_v49 = vld [vmem:[#allocation7 + $0x88] sm:$0xff] }
  0x26   :  { %255 = vmatpush.msrb.mxu0 %v184_v28  ;;  %222 = vmatpush.msra.mxu2 %v154_v33  ;;  %v139_v50 = vld [vmem:[#allocation7 + $0x90] sm:$0xff]  ;;  %v133_v51 = vld [vmem:[#allocation7 + $0x60] sm:$0xff]  ;;  %v160_v52 = vld [vmem:[#allocation7 + $0x138] sm:$0xff] }
  0x27   :  { %242 = vmatpush.msra.mxu3 %v155_v34  ;;  %203 = vmatpush.msra.mxu1 %v149_v35  ;;  %v134_v53 = vld [vmem:[#allocation7 + $0x68] sm:$0xff]  ;;  %v135_v54 = vld [vmem:[#allocation7 + $0x70] sm:$0xff]  ;;  %v156_v55 = vld [vmem:[#allocation7 + $0x118] sm:$0xff] }
  0x28   :  { %256 = vmatpush.msrb.mxu0 %v180_v32  ;;  %223 = vmatpush.msra.mxu2 %v150_v37  ;;  %v152_v56 = vld [vmem:[#allocation7 + $0xf8] sm:$0xff]  ;;  %v129_v61 = vld [vmem:[#allocation7 + $0x40] sm:$0xff]  ;;  %v130_v62 = vld [vmem:[#allocation7 + $0x48] sm:$0xff] }
  0x29   :  { %243 = vmatpush.msra.mxu3 %v151_v38  ;;  %204 = vmatpush.msra.mxu1 %v145_v39  ;;  %v148_v57 = vld [vmem:[#allocation7 + $0xd8] sm:$0xff]  ;;  %v131_v63 = vld [vmem:[#allocation7 + $0x50] sm:$0xff]  ;;  %v125_v1 = vld [vmem:[#allocation7 + $0x20] sm:$0xff] }
  0x2a   :  { %257 = vmatpush.msrb.mxu0 %v176_v36  ;;  %224 = vmatpush.msra.mxu2 %v146_v41  ;;  %v144_v58 = vld [vmem:[#allocation7 + $0xb8] sm:$0xff]  ;;  %v126_v2 = vld [vmem:[#allocation7 + $0x28] sm:$0xff]  ;;  %v127_v3 = vld [vmem:[#allocation7 + $0x30] sm:$0xff] }
  0x2b   :  { %244 = vmatpush.msra.mxu3 %v147_v42  ;;  %205 = vmatpush.msra.mxu1 %v141_v43  ;;  %v140_v59 = vld [vmem:[#allocation7 + $0x98] sm:$0xff]  ;;  %v121_v5 = vld [vmem:[#allocation7] sm:$0xff]  ;;  %v122_v6 = vld [vmem:[#allocation7 + $0x8] sm:$0xff] }
  0x2c   :  { %258 = vmatpush.msrb.mxu0 %v172_v40  ;;  %225 = vmatpush.msra.mxu2 %v142_v45  ;;  %v136_v60 = vld [vmem:[#allocation7 + $0x78] sm:$0xff]  ;;  %v123_v7 = vld [vmem:[#allocation7 + $0x10] sm:$0xff]  ;;  %v185_v13 = vld [vmem:[#allocation8] sm:$0xf] }
  0x2d   :  { %245 = vmatpush.msra.mxu3 %v143_v46  ;;  %206 = vmatpush.msra.mxu1 %v137_v47  ;;  %v132_v0 = vld [vmem:[#allocation7 + $0x58] sm:$0xff]  ;;  %v187_v14 = vperm.slane %v185_v13, 0  ;;  %v188_v15 = vperm.slane %v185_v13, 1  ;;  %v189_v17 = vperm.slane %v185_v13, 2  ;;  %v190_v20 = vperm.slane %v185_v13, 3 }
  0x2e   :  { %259 = vmatpush.msrb.mxu0 %v168_v44  ;;  %226 = vmatpush.msra.mxu2 %v138_v49  ;;  %v128_v4 = vld [vmem:[#allocation7 + $0x38] sm:$0xff] }
  0x2f   :  { %246 = vmatpush.msra.mxu3 %v139_v50  ;;  %207 = vmatpush.msra.mxu1 %v133_v51  ;;  %v124_v8 = vld [vmem:[#allocation7 + $0x18] sm:$0xff] }
  0x30   :  { %260 = vmatpush.msrb.mxu0 %v164_v48  ;;  %227 = vmatpush.msra.mxu2 %v134_v53  ;;  %v351_v9 = vld [vmem:[%s576_s2] ss:$0 sm:$0xff]  ;;  %s516_s2 = smov [#allocation10]  }
  0x31   :  { %247 = vmatpush.msra.mxu3 %v135_v54  ;;  %208 = vmatpush.msra.mxu1 %v129_v61  ;;  %s310_s19 = sshll.u32 %s516_s2, 4  ;;  %s311_s19 = int_to_ptr.vmem [resolvable:$true] %s310_s19 }
  0x32   :  { %261 = vmatpush.msrb.mxu0 %v160_v52  ;;  %228 = vmatpush.msra.mxu2 %v130_v62 }
  0x33   :  { %248 = vmatpush.msra.mxu3 %v131_v63  ;;  %209 = vmatpush.msra.mxu1 %v125_v1 }
  0x34   :  { %262 = vmatpush.msrb.mxu0 %v156_v55  ;;  %229 = vmatpush.msra.mxu2 %v126_v2 }
  0x35   :  { %249 = vmatpush.msra.mxu3 %v127_v3  ;;  %210 = vmatpush.msra.mxu1 %v121_v5 }
  0x36   :  { %263 = vmatpush.msrb.mxu0 %v152_v56  ;;  %230 = vmatpush.msra.mxu2 %v122_v6 }
  0x37   :  { %250 = vmatpush.msra.mxu3 %v123_v7 }
  0x38   :  { %264 = vmatpush.msrb.mxu0 %v148_v57 }
  0x3a   :  { %265 = vmatpush.msrb.mxu0 %v144_v58 }
  0x3c   :  { %266 = vmatpush.msrb.mxu0 %v140_v59 }
  0x3e   :  { %267 = vmatpush.msrb.mxu0 %v136_v60 }
  0x40   :  { %268 = vmatpush.msrb.mxu0 %v132_v0 }
  0x42   :  { %269 = vmatpush.msrb.mxu0 %v128_v4 }
  0x44   :  { %270 = vmatpush.msrb.mxu0 %v124_v8 }
  0xa2   :  { %v117_v10 = vpop.f32.mrf.mxu0 }
  0xa3   :  { %v118_v11 = vadd.f32 %v351_v9, %v117_v10 }
  0xa5   :  { %v120_v12 = vmax.f32 %v118_v11, 0.0 }
  0xa7   :  { %211 = vmatmul.f32.vlgmr.msra.gmra.mxu1 %v120_v12  ;;  %231 = vmatmul.f32.vlgmr.msra.gmra.mxu2 %v120_v12 }
  0xa8   :  { %251 = vmatmul.f32.vlgmr.msra.gmra.mxu3 %v120_v12  ;;  %271 = vmatmul.f32.vlgmr.msrb.gmra.mxu0 %v120_v12 }
 0x124   :  { %v212_v16 = vpop.f32.mrf.mxu1 }
 0x125   :  { %v213_v19 = vadd.f32 %v212_v16, %v187_v14  ;;  %v272_v23 = vpop.f32.mrf.mxu0 }
 0x126   :  { %v273_v26 = vadd.f32 %v272_v23, %v190_v20 }
 0x12a   :  { %v232_v18 = vpop.f32.mrf.mxu2 }
 0x12b   :  { %v233_v21 = vadd.f32 %v232_v18, %v188_v15  ;;  %v252_v22 = vpop.f32.mrf.mxu3 }
 0x12c   :  { %v253_v25 = vadd.f32 %v252_v22, %v189_v17 }
 0x12d   :  { %v275_v24 = vadd.f32 %v233_v21, %v213_v19 }
 0x12f   :  { %v276_v27 = vadd.f32 %v275_v24, %v253_v25 }
 0x131   :  { %v277_v28 = vadd.f32 %v276_v27, %v273_v26 }
 0x133   :  { %v278_v29 = vmul.f32 0.25, %v277_v28 }
 0x135   :  { %v279_v30 = vsub.f32 %v213_v19, %v278_v29  ;;  %v281_v31 = vsub.f32 %v233_v21, %v278_v29  ;;  %v284_v32 = vsub.f32 %v253_v25, %v278_v29  ;;  %291 = vst [vmem:[#allocation10] sm:$0xff] %v278_v29  ;;  %v287_v35 = vsub.f32 %v273_v26, %v278_v29 }
 0x136   :  { %315 = dma.vmem_to_hbm [thread:$0]  %s311_s19, 128, %s313_s22, [#allocation4]  }
 0x137   :  { %v280_v33 = vmul.f32 %v279_v30, %v279_v30  ;;  %v282_v34 = vmul.f32 %v281_v31, %v281_v31  ;;  %v285_v37 = vmul.f32 %v284_v32, %v284_v32  ;;  %v288_v39 = vmul.f32 %v287_v35, %v287_v35 }
 0x139   :  { %v283_v36 = vadd.f32 %v282_v34, %v280_v33 }
 0x13b   :  { %v286_v38 = vadd.f32 %v285_v37, %v283_v36 }
 0x13d   :  { %v289_v40 = vadd.f32 %v288_v39, %v286_v38 }
 0x13f   :  { %v290_v41 = vmul.f32 0.25, %v289_v40 }
 0x141   :  { %352 = vrsqrt.f32 %v290_v41  ;;  %vm299_vm1 = vcmp.eq.f32.partialorder %v290_v41, inf  ;;  %v302_v49 = vand.u32 2147483648, %v290_v41  ;;  %vm301_vm2 = vcmp.eq.f32.partialorder %v290_v41, 0.0 }
 0x147   :  { %v353_v42 = vpop.eup %352 }
 0x148   :  { %v293_v43 = vmul.f32 %v353_v42, %v290_v41 }
 0x14a   :  { %v294_v44 = vmul.f32 %v353_v42, %v293_v43 }
 0x14c   :  { %v295_v45 = vmul.f32 0.5, %v294_v44 }
 0x14e   :  { %v296_v46 = vsub.f32 1.5, %v295_v45 }
 0x150   :  { %v297_v47 = vmul.f32 %v353_v42, %v296_v46 }
 0x152   :  { %v298_v48 = vmul.f32 %v297_v47, %v290_v41 }
 0x154   :  { %v300_v50 = vsel %vm299_vm1, %v290_v41, %v298_v48 }
 0x155   :  { %v303_v51 = vsel %vm301_vm2, %v302_v49, %v300_v50 }
 0x156   :  { %304 = vst [vmem:[#allocation11] sm:$0xff] %v303_v51 }
 0x157   :  { %326 = dma.vmem_to_hbm [thread:$0]  %s322_s23, 128, %s324_s26, [#allocation12]  }
 0x158   :  { %504 = dma.done.wait [#allocation4], 128  }
 0x159   :  { %505 = vsyncadd [#allocation4], 4294967168 }
 0x15a   :  { %506 = dma.done.wait [#allocation12], 128  }
 0x15b   :  { %507 = vsyncadd [#allocation12], 4294967168 }
 0x15c   :  { %335 = vsyncpa [#allocation3], 1 }
 0x15d   :  { %336 = vsyncpa [#allocation6], 1 }
 0x15e   :  { %337 = vsyncpa [#allocation9], 1 }
 0x15f   :  { %338 = vsyncpa [#allocation4], 1 }
 0x160   :  { %339 = vsyncpa [#allocation12], 1 }

</bundles_post_ra>
